<compile_context>
chip_gen: v7x
topology: tpu7x:2x2x1
jax: 0.10.0
libtpu: 0.0.40
codegen_flags: <defaults>
</compile_context>

<pallas_src>
import functools

import jax
import jax.numpy as jnp
from jax.experimental import pallas as pl
from jax.experimental.pallas import tpu as pltpu


def _round_up(x, m):
    return ((x + m - 1) // m) * m


def _choose_tile(dim, align, cap):
    """Largest tile <= cap that is a multiple of `align` and divides `dim`.

    `dim` must already be a multiple of `align`, so a valid tile always
    exists (worst case `align` itself).  Guarantees zero extra padding.
    """
    if dim <= cap:
        return dim
    nb = -(-dim // cap)  # ceil(dim / cap)
    while True:
        if dim % nb == 0 and (dim // nb) % align == 0:
            return dim // nb
        nb += 1


def _matmul_kernel_direct(a_ref, b_ref, o_ref, *, compute_dtype):
    """f32 output: accumulate straight into the (VMEM-resident) output block."""
    @pl.when(pl.program_id(2) == 0)
    def _():
        o_ref[...] = jnp.zeros_like(o_ref)

    a = a_ref[...]
    b = b_ref[...]
    if compute_dtype is not None:
        a = a.astype(compute_dtype)
        b = b.astype(compute_dtype)
    o_ref[...] += jnp.dot(a, b, preferred_element_type=jnp.float32)


def _matmul_kernel_acc(a_ref, b_ref, o_ref, acc_ref, *, compute_dtype):
    """Narrow output dtypes: accumulate in an f32 VMEM scratch, cast at the end."""
    @pl.when(pl.program_id(2) == 0)
    def _():
        acc_ref[...] = jnp.zeros_like(acc_ref)

    a = a_ref[...]
    b = b_ref[...]
    if compute_dtype is not None:
        a = a.astype(compute_dtype)
        b = b.astype(compute_dtype)
    acc_ref[...] += jnp.dot(a, b, preferred_element_type=jnp.float32)

    @pl.when(pl.program_id(2) == pl.num_programs(2) - 1)
    def _():
        o_ref[...] = acc_ref[...].astype(o_ref.dtype)


def mat_add(a, b, *, tm=None, tn=None, tk=None, use_bf16_compute=False):
    """Pallas equivalent of MatAdd.forward: returns a @ b (2-D matmul).

    use_bf16_compute=True casts the A/B tiles to bf16 inside the kernel
    (f32 accumulation kept) for ~3x MXU throughput at the cost of input
    rounding; off by default to preserve f32 semantics.
    """
    assert a.ndim == 2 and b.ndim == 2, "this kernel implements 2-D matmul"
    M, K = a.shape
    K2, N = b.shape
    assert K == K2, "inner dimensions must match"

    out_dtype = jnp.result_type(a.dtype, b.dtype)
    compute_dtype = jnp.bfloat16 if use_bf16_compute else None

    a_bytes = jnp.dtype(a.dtype).itemsize
    b_bytes = jnp.dtype(b.dtype).itemsize
    out_bytes = jnp.dtype(out_dtype).itemsize

    # Minimal alignment padding: sublane (8) for M, lane (128) for K and N.
    Mp = _round_up(M, 8)
    Kp = _round_up(K, 128)
    Np = _round_up(N, 128)

    # Tile selection: biggest divisors of the padded dims under per-dim caps.
    # Caps keep the double-buffered footprint ~10 MiB (f32), safe on all of
    # v5e / v6e / v7x once vmem_limit_bytes is raised (see below).
    auto_tiles = tm is None and tn is None and tk is None
    cap_k = 2048 if max(a_bytes, b_bytes) <= 2 else 1024
    if tm is None:
        tm = _choose_tile(Mp, 8, 512)
    if tn is None:
        tn = _choose_tile(Np, 128, 512)
    if tk is None:
        tk = _choose_tile(Kp, 128, cap_k)

    # v7x megacore: guarantee >= 2 parallel output blocks when cheaply possible
    # so both TensorCores get work under (parallel, parallel, arbitrary).
    if auto_tiles and (Mp // tm) * (Np // tn) == 1:
        if tm % 16 == 0:
            tm //= 2
        elif tn % 256 == 0:
            tn //= 2

    # Pad to tile multiples (no-op when tiles were auto-chosen as divisors).
    Mp = _round_up(Mp, tm)
    Kp = _round_up(Kp, tk)
    Np = _round_up(Np, tn)
    if (Mp, Kp) != (M, K):
        a = jnp.pad(a, ((0, Mp - M), (0, Kp - K)))
    if (Kp, Np) != (K, N):
        b = jnp.pad(b, ((0, Kp - K), (0, Np - N)))

    gm, gn, gk = Mp // tm, Np // tn, Kp // tk

    direct_out = out_dtype == jnp.float32
    if direct_out:
        kernel = functools.partial(_matmul_kernel_direct, compute_dtype=compute_dtype)
        scratch_shapes = []
    else:
        kernel = functools.partial(_matmul_kernel_acc, compute_dtype=compute_dtype)
        scratch_shapes = [pltpu.VMEM((tm, tn), jnp.float32)]

    # Double-buffered A/B/out tiles (+ f32 acc scratch if needed).
    footprint = (
        2 * tm * tk * a_bytes
        + 2 * tk * tn * b_bytes
        + 2 * tm * tn * out_bytes
        + (0 if direct_out else tm * tn * 4)
    )
    # >= 32 MiB so v5e's 16 MiB scoped default doesn't reject the big tiles;
    # <= 48 MiB so we stay inside v7x's 64 MiB physical VMEM with headroom.
    vmem_limit = int(min(48 << 20, max(32 << 20, 2 * footprint)))

    # Truthful streamed-bytes estimate: A panel is re-read once per N-tile,
    # B panel once per M-tile, output written once.
    cost = pl.CostEstimate(
        flops=2 * Mp * Np * Kp,
        transcendentals=0,
        bytes_accessed=(
            a_bytes * Mp * Kp * gn + b_bytes * Kp * Np * gm + out_bytes * Mp * Np
        ),
    )

    out = pl.pallas_call(
        kernel,
        out_shape=jax.ShapeDtypeStruct((Mp, Np), out_dtype),
        grid_spec=pltpu.PrefetchScalarGridSpec(
            num_scalar_prefetch=0,
            grid=(gm, gn, gk),
            in_specs=[
                pl.BlockSpec((tm, tk), lambda i, j, k: (i, k)),
                pl.BlockSpec((tk, tn), lambda i, j, k: (k, j)),
            ],
            out_specs=pl.BlockSpec((tm, tn), lambda i, j, k: (i, j)),
            scratch_shapes=scratch_shapes,
        ),
        compiler_params=pltpu.CompilerParams(
            dimension_semantics=("parallel", "parallel", "arbitrary"),
            vmem_limit_bytes=vmem_limit,
        ),
        cost_estimate=cost,
    )(a, b)

    if (Mp, Np) != (M, N):
        out = out[:M, :N]
    return out


if __name__ == "__main__":
    key = jax.random.PRNGKey(0)
    ka, kb, kc, kd = jax.random.split(key, 4)

    # Case 1: aligned shapes (M, K) @ (K, N) — also exercises the megacore split.
    M, K, N = 256, 256, 128
    a = jax.random.normal(ka, (M, K), dtype=jnp.float32)
    b = jax.random.normal(kb, (K, N), dtype=jnp.float32)

    out = jax.block_until_ready(mat_add(a, b))
    ref = a @ b
    assert out.shape == (M, N) and out.dtype == ref.dtype
    assert jnp.allclose(out, ref, atol=1e-3, rtol=1e-3), "mismatch vs reference (aligned)"

    # Case 2: ragged shapes exercising the minimal-padding path.
    M2, K2, N2 = 40, 70, 33
    a2 = jax.random.normal(kc, (M2, K2), dtype=jnp.float32)
    b2 = jax.random.normal(kd, (K2, N2), dtype=jnp.float32)

    out2 = jax.block_until_ready(mat_add(a2, b2))
    ref2 = a2 @ b2
    assert out2.shape == (M2, N2)
    assert jnp.allclose(out2, ref2, atol=1e-3, rtol=1e-3), "mismatch vs reference (ragged)"

    print("KERNEL_OK")
</pallas_src>

<mosaic_0001>
module attributes {stable_mosaic.version = 11 : i64} {
  func.func @_matmul_kernel_direct(%arg0: i32, %arg1: i32, %arg2: i32, %arg3: memref<128x256xf32, #tpu.memory_space<vmem>>, %arg4: memref<256x128xf32, #tpu.memory_space<vmem>>, %arg5: memref<128x128xf32, #tpu.memory_space<vmem>>) attributes {dimension_semantics = [#tpu.dimension_semantics<parallel>, #tpu.dimension_semantics<parallel>, #tpu.dimension_semantics<arbitrary>], iteration_bounds = array<i64: 2, 1, 1>, scalar_prefetch = 0 : i64, scratch_operands = 0 : i64, tpu.core_type = #tpu.core_type<tc>, window_params = [{transform_indices = @transform_0, window_bounds = array<i64: 128, 256>}, {transform_indices = @transform_1, window_bounds = array<i64: 256, 128>}, {transform_indices = @transform_2, window_bounds = array<i64: 128, 128>}]} {
    %c0_i32 = arith.constant 0 : i32
    %0 = arith.cmpi eq, %arg2, %c0_i32 : i32
    %1 = arith.extui %0 : i1 to i32
    %c0_i32_0 = arith.constant 0 : i32
    %2 = arith.cmpi ne, %1, %c0_i32_0 : i32
    scf.if %2 {
      %cst_8 = arith.constant 0.000000e+00 : f32
      %9 = vector.broadcast %cst_8 : f32 to vector<128x128xf32>
      %c0_9 = arith.constant 0 : index
      %c0_10 = arith.constant 0 : index
      %10 = vector.load %arg5[%c0_9, %c0_10] : memref<128x128xf32, #tpu.memory_space<vmem>>, vector<128x128xf32>
      tpu.vector_store %arg5[%c0_9, %c0_10], %9 {strides = array<i32>} : memref<128x128xf32, #tpu.memory_space<vmem>>, vector<128x128xf32>,
    } else {
    }
    %c0 = arith.constant 0 : index
    %c0_1 = arith.constant 0 : index
    %3 = vector.load %arg3[%c0, %c0_1] : memref<128x256xf32, #tpu.memory_space<vmem>>, vector<128x256xf32>
    %c0_2 = arith.constant 0 : index
    %c0_3 = arith.constant 0 : index
    %4 = vector.load %arg4[%c0_2, %c0_3] : memref<256x128xf32, #tpu.memory_space<vmem>>, vector<256x128xf32>
    %c0_4 = arith.constant 0 : index
    %c0_5 = arith.constant 0 : index
    %5 = vector.load %arg5[%c0_4, %c0_5] : memref<128x128xf32, #tpu.memory_space<vmem>>, vector<128x128xf32>
    %cst = arith.constant dense<0.000000e+00> : vector<128x128xf32>
    %6 = tpu.matmul %3, %4, %cst {dimension_numbers = #tpu.dot_dimension_numbers<[1], [0], [0], [1], [0, 0, 1, 1], [], []>} : vector<128x256xf32>, vector<256x128xf32>, vector<128x128xf32> -> vector<128x128xf32>
    %7 = arith.addf %5, %6 : vector<128x128xf32>
    %c0_6 = arith.constant 0 : index
    %c0_7 = arith.constant 0 : index
    %8 = vector.load %arg5[%c0_6, %c0_7] : memref<128x128xf32, #tpu.memory_space<vmem>>, vector<128x128xf32>
    tpu.vector_store %arg5[%c0_6, %c0_7], %7 {strides = array<i32>} : memref<128x128xf32, #tpu.memory_space<vmem>>, vector<128x128xf32>,
    return
  }
  func.func @transform_0(%arg0: i32, %arg1: i32, %arg2: i32) -> (i32, i32) {
    %c0_i32 = arith.constant 0 : i32
    return %arg0, %arg2 : i32, i32
  }
  func.func @transform_1(%arg0: i32, %arg1: i32, %arg2: i32) -> (i32, i32) {
    %c0_i32 = arith.constant 0 : i32
    return %arg2, %arg1 : i32, i32
  }
  func.func @transform_2(%arg0: i32, %arg1: i32, %arg2: i32) -> (i32, i32) {
    %c0_i32 = arith.constant 0 : i32
    return %arg0, %arg1 : i32, i32
  }
}

</mosaic_0001>

<bundles_post_ra>
// kernel: tpu_custom_call.1
= control target key start
LH: loop header
LB: loop body
LE: loop exit
PB: predicated region body
PF: predicated region fallthrough
CT: control target
= control target key end

     0   :  { %7 = vsyncpa [#allocation3], 0  ;;  %s1285_s0 = inlined_call_operand.hbm [shape: f32[256,256], index: 0, kind: input, shape index: {}]   ;;  %s1286_s1 = inlined_call_operand.hbm [shape: f32[256,128], index: 1, kind: input, shape index: {}]   ;;  %s1287_s2 = inlined_call_operand.hbm [shape: f32[256,128], index: 2, kind: output, shape index: {}]  }
   0x1   :  { %9 = vsyncpa [#allocation3 + $0x1], 0 }
   0x2   :  { %10 = vsyncpa [#allocation6], 0 }
   0x3   :  { %11 = vsyncpa [#allocation4], 0 }
   0x4   :  { %13 = vsyncpa [#allocation4 + $0x1], 0  ;;  %s1012_s9 = smov 0   ;;  %s1014_s10 = smov 0  }
   0x5   :  { %s1016_s11 = smov 0   ;;  %s1018_s12 = smov 0  }
   0x6   :  { %s1020_s13 = smov 0   ;;  %s1022_s14 = smov 0  }
   0x7 LB: > { %s613_s15 = sadd.s32 4294967295, %s986_s14   ;;  %s614_s16 = sadd.s32 4294967294, %s986_s14   ;;  %s986_s14 = sphi %s1022_s14, %s19_s14   ;;  %s982_s13 = sphi %s1020_s13, %s1311_s13   ;;  %s978_s12 = sphi %s1018_s12, %s1310_s12   ;;  %s974_s11 = sphi %s1016_s11, %s1309_s11   ;;  %s970_s10 = sphi %s1014_s10, %s1308_s10   ;;  %s966_s9 = sphi %s1012_s9, %s1307_s9  }
   0x8   : > { %p60_p0 = scmp.ne.s32.totalorder %s970_s10, %s966_s9  ;;  %p1046_p1 = scmp.eq.s32.totalorder %s613_s15, 0 }
   0x9   : > { %p1050_p2 = scmp.eq.s32.totalorder %s613_s15, 1  ;;  %p120_p3 = scmp.eq.s32.totalorder %s614_s16, 1 }
   0xa   : > { %s1292_s17 = scalar_select %p1046_p1, 1, 0 }
   0xb   : > { %s1293_s18 = scalar_select %p1050_p2, 1, 0 }
   0xc   : > { %p1056_p4 = por %p1046_p1, %p60_p0  ;;  %p615_p5 = scmp.ge.s32.totalorder %s986_s14, 1 }
   0xd   : > { %p1061_p6 = por %p120_p3, %p60_p0  ;;  %p127_p7 = scmp.lt.s32.totalorder %s986_s14, 3 }
   0xe   : > { %s1294_s19 = scalar_select %p1056_p4, 1, 0 }
   0xf   : > { %s1295_s20 = scalar_select %p1061_p6, 1, 0 }
  0x10   : > { %p1066_p8 = pnand %p615_p5, %p127_p7  ;;  %s988_s22 = smov [#allocation5]  }
  0x11   : > { %s143_s23 = sshll.u32 %s988_s22, 4  ;;  %s38_s25 = sadd.s32 1, %s982_s13  ;;  %s144_s23 = int_to_ptr.vmem [resolvable:$true] %s143_s23 }
  0x12   : > { %s1296_s21 = scalar_select %p1066_p8, 1, 0 }
  0x13   : > { %p770_p9 = pneg %p1066_p8  ;;  %s842_s28 = scalar_lea.hbm %s1286_s1, 4096 }
  0x14   : > { %p843_p12 = scmp.ne.s32.totalorder %s1286_s1, %s842_s28  ;;  %p849_p5 = scmp.lt.u32.totalorder %s842_s28, %s1286_s1 }
  0x15   : > { %p1075_p11 = pnand %p770_p9, %p1046_p1 }
  0x17   : > { %p844_p13 = pneg %p1075_p11 }
  0x19   : > { %p845_p0 = pnand %p844_p13, %p843_p12 }
  0x1b   : > { %p846_p3 = pneg %p845_p0 }
  0x1d   : > { %p851_p7 = pnand %p849_p5, %p846_p3 }
  0x1f   : > { %854 = shalt.err (!%p851_p7)
}
  0x20   : > { %s855_s5 = scalar_lea.vmem %s144_s23, 4096  ;;  %p863_p1 = scmp.lt.s32.totalorder %s144_s23, %s144_s23 }
  0x21   : > { %p856_p9 = scmp.ne.s32.totalorder %s144_s23, %s855_s5  ;;  %p864_p4 = scmp.lt.s32.totalorder %s855_s5, %s855_s5 }
  0x23   : > { %p858_p10 = pnand %p856_p9, %p844_p13  ;;  %p865_p8 = por %p864_p4, %p863_p1 }
  0x25   : > { %p859_p6 = pneg %p858_p10 }
  0x27   : > { %p866_p2 = pnand %p865_p8, %p859_p6 }
  0x29   : > { %869 = shalt.err (!%p866_p2)
}
  0x2a   : > { %s989_s6 = smov 128   ;;  %s990_s7 = smov 8  }
  0x2b   : > { %773 = dma.hbm_to_vmem [thread:$0]  (!%p1075_p11), %s1286_s1, 4096, %s144_s23, [#allocation6], %s989_s6, %s989_s6, %s990_s7  }
  0x2c   : > { %p40_p1 = scmp.ge.s32.totalorder %s38_s25, 2  ;;  %s47_s16 = sadd.s32 1, %s974_s11 }
  0x2d   : > { %p54_p2 = scmp.ne.s32.totalorder %s974_s11, %s970_s10  ;;  %p55_p4 = scmp.eq.s32.totalorder %s986_s14, 0 }
  0x2e   : > { %s1313_s25 = smov (%p40_p1, %s38_s25), 0  ;;  %p1299_p8 = scmp.ne.s32.totalorder %s1293_s18, 0 }
  0x2f   : > { %p1102_p6 = por %p55_p4, %p54_p2  ;;  %s42_s24 = ssub.s32 %s982_s13, %s1313_s25 }
  0x30   : > { %p1108_p10 = por %p1299_p8, %p54_p2  ;;  %p783_p12 = scmp.lt.s32.totalorder %s986_s14, 2 }
  0x31   : > { %p45_p11 = scmp.eq.s32.totalorder %s42_s24, 0  ;;  %s157_s23 = sand.u32 1, %s974_s11  }
  0x32   : > { %s618_s27 = sshll.u32 %s157_s23, 8  ;;  %s632_s29 = sshll.u32 %s982_s13, 12 }
  0x33   : > { %s1117_s28 = scalar_select %p45_p11, %s974_s11, %s47_s16  }
  0x34   : > { %s1123_s4 = scalar_lea.hbm %s1285_s0, %s632_s29  ;;  %s161_s18 = scalar_lea.vmem [#allocation2], %s618_s27 }
  0x35   : > { %s171_s5 = sshll.u32 %s161_s18, 4  ;;  %p1129_p13 = pnand %p783_p12, %p1102_p6  ;;  %s1125_s5 = int_to_ptr.vmem [resolvable:$true] %s171_s5 }
  0x36   : > { %s1133_s7 = scalar_lea.sflag [#allocation3], %s157_s23  ;;  %s870_s8 = scalar_lea.hbm %s1123_s4, 4096 }
  0x37   : > { %p871_p0 = scmp.ne.s32.totalorder %s1123_s4, %s870_s8  ;;  %p872_p3 = pneg %p1129_p13 }
  0x38   : > { %s875_s22 = scalar_lea.hbm %s1285_s0, 8192  ;;  %p876_p9 = scmp.lt.u32.totalorder %s1123_s4, %s1285_s0 }
  0x39   : > { %p873_p5 = pnand %p872_p3, %p871_p0  ;;  %p877_p1 = scmp.lt.u32.totalorder %s875_s22, %s870_s8 }
  0x3a   : > { %p879_p4 = scmp.lt.u32.totalorder %s870_s8, %s1123_s4 }
  0x3b   : > { %p874_p7 = pneg %p873_p5  ;;  %p878_p2 = por %p877_p1, %p876_p9 }
  0x3d   : > { %p880_p6 = por %p879_p4, %p878_p2 }
  0x3f   : > { %p881_p8 = pnand %p880_p6, %p874_p7 }
  0x41   : > { %884 = shalt.err (!%p881_p8)
}
  0x42   : > { %s885_s23 = scalar_lea.vmem %s1125_s5, 4096  ;;  %s991_s29 = smov [#allocation2]  }
  0x43   : > { %p886_p12 = scmp.ne.s32.totalorder %s1125_s5, %s885_s23  ;;  %s890_s30 = sshll.u32 %s991_s29, 4  ;;  %s891_s30 = int_to_ptr.vmem [resolvable:$false] %s890_s30 }
  0x44   : > { %s892_s3 = scalar_lea.vmem %s891_s30, 8192  ;;  %p893_p5 = scmp.lt.s32.totalorder %s1125_s5, %s891_s30 }
  0x45   : > { %p888_p11 = pnand %p886_p12, %p872_p3  ;;  %p894_p9 = scmp.lt.s32.totalorder %s892_s3, %s885_s23 }
  0x47   : > { %p889_p0 = pneg %p888_p11  ;;  %p895_p1 = por %p894_p9, %p893_p5 }
  0x49   : > { %p896_p2 = pnand %p895_p1, %p889_p0 }
  0x4b   : > { %899 = shalt.err (!%p896_p2)
}
  0x4c   : > { %s992_s18 = smov 256   ;;  %s993_s8 = smov 16  }
  0x4d   : > { %777 = dma.hbm_to_vmem [thread:$0]  (!%p1129_p13), %s1123_s4, 4096, %s1125_s5, %s1133_s7, %s992_s18, %s992_s18, %s993_s8  }
  0x4e   : > { %p1302_p3 = scmp.ne.s32.totalorder %s1296_s21, 0 }
  0x4f   : > { %s1164_s15 = sand.u32 (!%p1302_p3), 1, %s970_s10   ;;  %p1303_p7 = scmp.ne.s32.totalorder (!%p1302_p3), %s1294_s19, 0 }
  0x50   : > { %183 = sbr.rel (%p1302_p3) target bundleno = 384 (0x180), region = 28  ;;  %s623_s16 = sshll.u32 (!%p1302_p3), %s1164_s15, 8 }
  0x51   : > { %s186_s22 = scalar_lea.sflag (!%p1302_p3), [#allocation3], %s1164_s15  ;;  %s1168_s24 = scalar_lea.vmem (!%p1302_p3), [#allocation2], %s623_s16 }
  0x57   : > { %953 = dma.done.wait (%p1303_p7), %s186_s22, 4096  }
  0x58   : > { %955 = vsyncadd (%p1303_p7), %s186_s22, 4294963200  ;;  %p1304_p13 = scmp.ne.s32.totalorder %s1292_s17, 0 }
  0x5a   : > { %957 = dma.done.wait (%p1304_p13), [#allocation6], 4096  }
  0x5b   : > { %959 = vsyncadd (%p1304_p13), [#allocation6], 4294963200  ;;  %v286_v0 = vld [vmem:[#allocation5 + $0x80] sm:$0xff]  ;;  %v287_v1 = vld [vmem:[#allocation5 + $0x88] sm:$0xff]  ;;  %s625_s17 = sshll.u32 %s1164_s15, 7  ;;  %s633_s21 = sshll.u32 %s978_s12, 11 }
  0x5c   : > { %v270_v2 = vld [vmem:[#allocation5] sm:$0xff]  ;;  %v714_v3 = vpack.c.bf16 %v287_v1, %v286_v0  ;;  %v271_v4 = vld [vmem:[#allocation5 + $0x8] sm:$0xff]  ;;  %v288_v5 = vld [vmem:[#allocation5 + $0x90] sm:$0xff]  ;;  %s1211_s19 = scalar_lea.vmem [#allocation7], %s625_s17  ;;  %s1232_s7 = scalar_lea.hbm %s1287_s2, %s633_s21 }
  0x5d   : > { %v289_v6 = vld [vmem:[#allocation5 + $0x98] sm:$0xff]  ;;  %v716_v7 = vpack.c.bf16 %v271_v4, %v270_v2  ;;  %v272_v9 = vld [vmem:[#allocation5 + $0x10] sm:$0xff]  ;;  %v290_v11 = vld [vmem:[#allocation5 + $0xa0] sm:$0xff]  ;;  %s510_s4 = sshll.u32 %s1211_s19, 4  ;;  %s496_s12 = scalar_lea.sflag [#allocation4], %s1164_s15  ;;  %s1234_s4 = int_to_ptr.vmem [resolvable:$true] %s510_s4 }
  0x5e   : > { %v718_v8 = vpack.c.bf16 %v289_v6, %v288_v5  ;;  %v273_v10 = vld [vmem:[#allocation5 + $0x18] sm:$0xff]  ;;  %715 = vmatprep.subr.bf16.mxu0 %v714_v3  ;;  %746 = vmatprep.subr.bf16.mxu1 %v714_v3  ;;  %v291_v12 = vld [vmem:[#allocation5 + $0xa8] sm:$0xff]  ;;  %v274_v15 = vld [vmem:[#allocation5 + $0x20] sm:$0xff]  ;;  %s900_s27 = scalar_lea.vmem %s1234_s4, 2048  ;;  %s994_s23 = smov [#allocation7]  }
  0x5f   : > { %717 = vmatpush3.bf16.msra.mxu0 %v716_v7  ;;  %754 = vmatpush3.bf16.msra.mxu1 %v716_v7  ;;  %v720_v13 = vpack.c.bf16 %v273_v10, %v272_v9  ;;  %v722_v14 = vpack.c.bf16 %v291_v12, %v290_v11  ;;  %v275_v16 = vld [vmem:[#allocation5 + $0x28] sm:$0xff]  ;;  %v292_v17 = vld [vmem:[#allocation5 + $0xb0] sm:$0xff]  ;;  %v293_v18 = vld [vmem:[#allocation5 + $0xb8] sm:$0xff]  ;;  %p901_p4 = scmp.ne.s32.totalorder %s1234_s4, %s900_s27  ;;  %s904_s29 = sshll.u32 %s994_s23, 4  ;;  %s905_s29 = int_to_ptr.vmem [resolvable:$false] %s904_s29 }
  0x60   : > { %719 = vmatprep.subr.bf16.mxu0 %v718_v8  ;;  %747 = vmatprep.subr.bf16.mxu1 %v718_v8  ;;  %v724_v19 = vpack.c.bf16 %v275_v16, %v274_v15  ;;  %v726_v20 = vpack.c.bf16 %v293_v18, %v292_v17  ;;  %v276_v21 = vld [vmem:[#allocation5 + $0x30] sm:$0xff]  ;;  %v277_v22 = vld [vmem:[#allocation5 + $0x38] sm:$0xff]  ;;  %v294_v23 = vld [vmem:[#allocation5 + $0xc0] sm:$0xff]  ;;  %s906_s30 = scalar_lea.vmem %s905_s29, 4096  ;;  %p907_p12 = scmp.lt.s32.totalorder %s1234_s4, %s905_s29 }
  0x61   : > { %v295_v24 = vld [vmem:[#allocation5 + $0xc8] sm:$0xff]  ;;  %v728_v27 = vpack.c.bf16 %v277_v22, %v276_v21  ;;  %v278_v29 = vld [vmem:[#allocation5 + $0x40] sm:$0xff]  ;;  %v296_v31 = vld [vmem:[#allocation5 + $0xd0] sm:$0xff]  ;;  %p902_p6 = pnand %p901_p4, %p1108_p10  ;;  %p908_p11 = scmp.lt.s32.totalorder %s906_s30, %s900_s27 }
  0x62   : > { %v239_v25 = vld [vmem:[%s1168_s24 + $0x8] sm:$0xff]  ;;  %v730_v28 = vpack.c.bf16 %v295_v24, %v294_v23  ;;  %v297_v32 = vld [vmem:[#allocation5 + $0xd8] sm:$0xff]  ;;  %v280_v35 = vld [vmem:[#allocation5 + $0x50] sm:$0xff] }
  0x63   : > { %721 = vmatpush3.bf16.msra.mxu0 %v720_v13  ;;  %755 = vmatpush3.bf16.msra.mxu1 %v720_v13  ;;  %v255_v26 = vld [vmem:[%s1168_s24 + $0x88] sm:$0xff]  ;;  %v734_v34 = vpack.c.bf16 %v297_v32, %v296_v31  ;;  %v281_v36 = vld [vmem:[#allocation5 + $0x58] sm:$0xff]  ;;  %v298_v37 = vld [vmem:[#allocation5 + $0xe0] sm:$0xff]  ;;  %p903_p8 = pneg %p902_p6  ;;  %p909_p0 = por %p908_p11, %p907_p12 }
  0x64   : > { %723 = vmatprep.subr.bf16.mxu0 %v722_v14  ;;  %748 = vmatprep.subr.bf16.mxu1 %v722_v14  ;;  %v279_v30 = vld [vmem:[#allocation5 + $0x48] sm:$0xff]  ;;  %v736_v39 = vpack.c.bf16 %v281_v36, %v280_v35  ;;  %v282_v41 = vld [vmem:[#allocation5 + $0x60] sm:$0xff]  ;;  %v300_v43 = vld [vmem:[#allocation5 + $0xf0] sm:$0xff] }
  0x65   : > { %382 = vmatprep.mubr.f32.mxu0 %v239_v25  ;;  %422 = vmatprep.mubr.f32.mxu1 %v255_v26  ;;  %v732_v33 = vpack.c.bf16 %v279_v30, %v278_v29  ;;  %v299_v38 = vld [vmem:[#allocation5 + $0xe8] sm:$0xff]  ;;  %v301_v44 = vld [vmem:[#allocation5 + $0xf8] sm:$0xff]  ;;  %v284_v47 = vld [vmem:[#allocation5 + $0x70] sm:$0xff]  ;;  %p910_p5 = pnand %p909_p0, %p903_p8 }
  0x66   : > { %v738_v40 = vpack.c.bf16 %v299_v38, %v298_v37  ;;  %v283_v42 = vld [vmem:[#allocation5 + $0x68] sm:$0xff]  ;;  %v742_v46 = vpack.c.bf16 %v301_v44, %v300_v43  ;;  %v285_v48 = vld [vmem:[#allocation5 + $0x78] sm:$0xff]  ;;  %v238_v50 = vld [vmem:[%s1168_s24] sm:$0xff] }
  0x67   : > { %725 = vmatpush3.bf16.msra.mxu0 %v724_v19  ;;  %756 = vmatpush3.bf16.msra.mxu1 %v724_v19  ;;  %v740_v45 = vpack.c.bf16 %v283_v42, %v282_v41  ;;  %v744_v49 = vpack.c.bf16 %v285_v48, %v284_v47  ;;  %v254_v51 = vld [vmem:[%s1168_s24 + $0x80] sm:$0xff]  ;;  %v241_v52 = vld [vmem:[%s1168_s24 + $0x18] sm:$0xff]  ;;  %v240_v54 = vld [vmem:[%s1168_s24 + $0x10] sm:$0xff] }
  0x68   : > { %727 = vmatprep.subr.bf16.mxu0 %v726_v20  ;;  %749 = vmatprep.subr.bf16.mxu1 %v726_v20  ;;  %v257_v53 = vld [vmem:[%s1168_s24 + $0x98] sm:$0xff]  ;;  %v256_v55 = vld [vmem:[%s1168_s24 + $0x90] sm:$0xff]  ;;  %v243_v56 = vld [vmem:[%s1168_s24 + $0x28] sm:$0xff] }
  0x69   : > { %v259_v57 = vld [vmem:[%s1168_s24 + $0xa8] sm:$0xff]  ;;  %v242_v58 = vld [vmem:[%s1168_s24 + $0x20] sm:$0xff]  ;;  %v245_v60 = vld [vmem:[%s1168_s24 + $0x38] sm:$0xff] }
  0x6a   : > { %v258_v59 = vld [vmem:[%s1168_s24 + $0xa0] sm:$0xff]  ;;  %v261_v61 = vld [vmem:[%s1168_s24 + $0xb8] sm:$0xff]  ;;  %v244_v62 = vld [vmem:[%s1168_s24 + $0x30] sm:$0xff] }
  0x6b   : > { %729 = vmatpush3.bf16.msra.mxu0 %v728_v27  ;;  %757 = vmatpush3.bf16.msra.mxu1 %v728_v27  ;;  %v260_v63 = vld [vmem:[%s1168_s24 + $0xb0] sm:$0xff]  ;;  %v247_v0 = vld [vmem:[%s1168_s24 + $0x48] sm:$0xff]  ;;  %v246_v2 = vld [vmem:[%s1168_s24 + $0x40] sm:$0xff] }
  0x6c   : > { %731 = vmatprep.subr.bf16.mxu0 %v730_v28  ;;  %750 = vmatprep.subr.bf16.mxu1 %v730_v28  ;;  %v263_v1 = vld [vmem:[%s1168_s24 + $0xc8] sm:$0xff]  ;;  %v262_v3 = vld [vmem:[%s1168_s24 + $0xc0] sm:$0xff]  ;;  %v249_v4 = vld [vmem:[%s1168_s24 + $0x58] sm:$0xff] }
  0x6d   : > { %v265_v5 = vld [vmem:[%s1168_s24 + $0xd8] sm:$0xff]  ;;  %v248_v6 = vld [vmem:[%s1168_s24 + $0x50] sm:$0xff]  ;;  %v251_v8 = vld [vmem:[%s1168_s24 + $0x68] sm:$0xff] }
  0x6e   : > { %v264_v7 = vld [vmem:[%s1168_s24 + $0xd0] sm:$0xff]  ;;  %v267_v9 = vld [vmem:[%s1168_s24 + $0xe8] sm:$0xff]  ;;  %v250_v10 = vld [vmem:[%s1168_s24 + $0x60] sm:$0xff] }
  0x6f   : > { %733 = vmatpush3.bf16.msra.mxu0 %v732_v33  ;;  %758 = vmatpush3.bf16.msra.mxu1 %v732_v33  ;;  %v266_v11 = vld [vmem:[%s1168_s24 + $0xe0] sm:$0xff]  ;;  %v253_v12 = vld [vmem:[%s1168_s24 + $0x78] sm:$0xff]  ;;  %v252_v14 = vld [vmem:[%s1168_s24 + $0x70] sm:$0xff] }
  0x70   : > { %735 = vmatprep.subr.bf16.mxu0 %v734_v34  ;;  %751 = vmatprep.subr.bf16.mxu1 %v734_v34  ;;  %v269_v13 = vld [vmem:[%s1168_s24 + $0xf8] sm:$0xff]  ;;  %v268_v15 = vld [vmem:[%s1168_s24 + $0xf0] sm:$0xff] }
  0x73   : > { %737 = vmatpush3.bf16.msra.mxu0 %v736_v39  ;;  %759 = vmatpush3.bf16.msra.mxu1 %v736_v39 }
  0x74   : > { %739 = vmatprep.subr.bf16.mxu0 %v738_v40  ;;  %752 = vmatprep.subr.bf16.mxu1 %v738_v40 }
  0x77   : > { %741 = vmatpush3.bf16.msra.mxu0 %v740_v45  ;;  %760 = vmatpush3.bf16.msra.mxu1 %v740_v45 }
  0x78   : > { %743 = vmatprep.subr.bf16.mxu0 %v742_v46  ;;  %753 = vmatprep.subr.bf16.mxu1 %v742_v46 }
  0x7b   : > { %745 = vmatpush3.bf16.msra.mxu0 %v744_v49  ;;  %761 = vmatpush3.bf16.msra.mxu1 %v744_v49 }
  0x7e   : > { %383 = vmatmul.mubr.f32.vlgmr.msra.gmra.mrb[0].mxu0 %v238_v50  ;;  %423 = vmatmul.mubr.f32.vlgmr.msra.gmra.mrb[0].mxu1 %v254_v51 }
  0x7f   : > { %387 = vmatprep.mubr.f32.mxu0 %v241_v52  ;;  %427 = vmatprep.mubr.f32.mxu1 %v257_v53 }
  0x82   : > { %388 = vmatmul.mubr.f32.gmra.mrb[2].mxu0 %v240_v54  ;;  %428 = vmatmul.mubr.f32.gmra.mrb[2].mxu1 %v256_v55 }
  0x83   : > { %392 = vmatprep.mubr.f32.mxu0 %v243_v56  ;;  %432 = vmatprep.mubr.f32.mxu1 %v259_v57 }
  0x86   : > { %393 = vmatmul.mubr.f32.gmra.mrb[4].mxu0 %v242_v58  ;;  %433 = vmatmul.mubr.f32.gmra.mrb[4].mxu1 %v258_v59 }
  0x87   : > { %397 = vmatprep.mubr.f32.mxu0 %v245_v60  ;;  %437 = vmatprep.mubr.f32.mxu1 %v261_v61 }
  0x8a   : > { %398 = vmatmul.mubr.f32.gmra.mrb[6].mxu0 %v244_v62  ;;  %438 = vmatmul.mubr.f32.gmra.mrb[6].mxu1 %v260_v63 }
  0x8b   : > { %402 = vmatprep.mubr.f32.mxu0 %v247_v0  ;;  %442 = vmatprep.mubr.f32.mxu1 %v263_v1 }
  0x8e   : > { %403 = vmatmul.mubr.f32.gmra.mrb[8].mxu0 %v246_v2  ;;  %443 = vmatmul.mubr.f32.gmra.mrb[8].mxu1 %v262_v3 }
  0x8f   : > { %407 = vmatprep.mubr.f32.mxu0 %v249_v4  ;;  %447 = vmatprep.mubr.f32.mxu1 %v265_v5 }
  0x92   : > { %408 = vmatmul.mubr.f32.gmra.mrb[10].mxu0 %v248_v6  ;;  %448 = vmatmul.mubr.f32.gmra.mrb[10].mxu1 %v264_v7 }
  0x93   : > { %412 = vmatprep.mubr.f32.mxu0 %v251_v8  ;;  %452 = vmatprep.mubr.f32.mxu1 %v267_v9 }
  0x96   : > { %413 = vmatmul.mubr.f32.gmra.mrb[12].mxu0 %v250_v10  ;;  %453 = vmatmul.mubr.f32.gmra.mrb[12].mxu1 %v266_v11 }
  0x97   : > { %417 = vmatprep.mubr.f32.mxu0 %v253_v12  ;;  %457 = vmatprep.mubr.f32.mxu1 %v269_v13 }
  0x9a   : > { %418 = vmatmul.mubr.f32.gmra.mrb[14].mxu0 %v252_v14  ;;  %458 = vmatmul.mubr.f32.gmra.mrb[14].mxu1 %v268_v15 }
 0x151   : > { %v666_v16 = vpop.f32.mrb[0].mxu0  ;;  %v690_v17 = vpop.f32.mrb[0].mxu1 }
 0x152   : > { %v667_v18 = vpop.f32.mrb[1].mxu0  ;;  %v691_v19 = vpop.f32.mrb[1].mxu1 }
 0x153   : > { %v668_v20 = vadd.f32 %v667_v18, %v666_v16  ;;  %v692_v21 = vadd.f32 %v691_v19, %v690_v17 }
 0x155   : > { %v669_v22 = vpop.f32.mrb[2].mxu0  ;;  %v693_v23 = vpop.f32.mrb[2].mxu1  ;;  %479 = vst [vmem:[%s1211_s19] sm:$0xff] %v668_v20  ;;  %487 = vst [vmem:[%s1211_s19 + $0x40] sm:$0xff] %v692_v21 }
 0x156   : > { %v670_v24 = vpop.f32.mrb[3].mxu0  ;;  %v694_v25 = vpop.f32.mrb[3].mxu1 }
 0x157   : > { %v671_v26 = vadd.f32 %v670_v24, %v669_v22  ;;  %v695_v27 = vadd.f32 %v694_v25, %v693_v23 }
 0x159   : > { %v672_v28 = vpop.f32.mrb[4].mxu0  ;;  %v696_v29 = vpop.f32.mrb[4].mxu1  ;;  %480 = vst [vmem:[%s1211_s19 + $0x8] sm:$0xff] %v671_v26  ;;  %488 = vst [vmem:[%s1211_s19 + $0x48] sm:$0xff] %v695_v27 }
 0x15a   : > { %v673_v30 = vpop.f32.mrb[5].mxu0  ;;  %v697_v31 = vpop.f32.mrb[5].mxu1 }
 0x15b   : > { %v674_v32 = vadd.f32 %v673_v30, %v672_v28  ;;  %v698_v33 = vadd.f32 %v697_v31, %v696_v29 }
 0x15d   : > { %v675_v34 = vpop.f32.mrb[6].mxu0  ;;  %v699_v35 = vpop.f32.mrb[6].mxu1  ;;  %481 = vst [vmem:[%s1211_s19 + $0x10] sm:$0xff] %v674_v32  ;;  %489 = vst [vmem:[%s1211_s19 + $0x50] sm:$0xff] %v698_v33 }
 0x15e   : > { %v676_v36 = vpop.f32.mrb[7].mxu0  ;;  %v700_v37 = vpop.f32.mrb[7].mxu1 }
 0x15f   : > { %v677_v38 = vadd.f32 %v676_v36, %v675_v34  ;;  %v701_v39 = vadd.f32 %v700_v37, %v699_v35 }
 0x161   : > { %v678_v40 = vpop.f32.mrb[8].mxu0  ;;  %v702_v41 = vpop.f32.mrb[8].mxu1  ;;  %482 = vst [vmem:[%s1211_s19 + $0x18] sm:$0xff] %v677_v38  ;;  %490 = vst [vmem:[%s1211_s19 + $0x58] sm:$0xff] %v701_v39 }
 0x162   : > { %v679_v42 = vpop.f32.mrb[9].mxu0  ;;  %v703_v43 = vpop.f32.mrb[9].mxu1 }
 0x163   : > { %v680_v44 = vadd.f32 %v679_v42, %v678_v40  ;;  %v704_v45 = vadd.f32 %v703_v43, %v702_v41 }
 0x165   : > { %v681_v46 = vpop.f32.mrb[10].mxu0  ;;  %v705_v47 = vpop.f32.mrb[10].mxu1  ;;  %483 = vst [vmem:[%s1211_s19 + $0x20] sm:$0xff] %v680_v44  ;;  %491 = vst [vmem:[%s1211_s19 + $0x60] sm:$0xff] %v704_v45 }
 0x166   : > { %v682_v48 = vpop.f32.mrb[11].mxu0  ;;  %v706_v49 = vpop.f32.mrb[11].mxu1 }
 0x167   : > { %v683_v50 = vadd.f32 %v682_v48, %v681_v46  ;;  %v707_v51 = vadd.f32 %v706_v49, %v705_v47 }
 0x169   : > { %v684_v52 = vpop.f32.mrb[12].mxu0  ;;  %v708_v53 = vpop.f32.mrb[12].mxu1  ;;  %484 = vst [vmem:[%s1211_s19 + $0x28] sm:$0xff] %v683_v50  ;;  %492 = vst [vmem:[%s1211_s19 + $0x68] sm:$0xff] %v707_v51 }
 0x16a   : > { %v685_v54 = vpop.f32.mrb[13].mxu0  ;;  %v709_v55 = vpop.f32.mrb[13].mxu1 }
 0x16b   : > { %v686_v56 = vadd.f32 %v685_v54, %v684_v52  ;;  %v710_v57 = vadd.f32 %v709_v55, %v708_v53 }
 0x16d   : > { %v687_v58 = vpop.f32.mrb[14].mxu0  ;;  %v711_v59 = vpop.f32.mrb[14].mxu1  ;;  %485 = vst [vmem:[%s1211_s19 + $0x30] sm:$0xff] %v686_v56  ;;  %493 = vst [vmem:[%s1211_s19 + $0x70] sm:$0xff] %v710_v57 }
 0x16e   : > { %v688_v60 = vpop.f32.mrb[15].mxu0  ;;  %v712_v61 = vpop.f32.mrb[15].mxu1 }
 0x16f   : > { %v689_v62 = vadd.f32 %v688_v60, %v687_v58  ;;  %v713_v63 = vadd.f32 %v712_v61, %v711_v59 }
 0x171   : > { %486 = vst [vmem:[%s1211_s19 + $0x38] sm:$0xff] %v689_v62  ;;  %494 = vst [vmem:[%s1211_s19 + $0x78] sm:$0xff] %v713_v63 }
 0x172   : > { %913 = shalt.err (!%p910_p5)
}
 0x173   : > { %s914_s3 = scalar_lea.hbm %s1232_s7, 2048  ;;  %s918_s16 = scalar_lea.hbm %s1287_s2, 4096 }
 0x174   : > { %p915_p9 = scmp.ne.s32.totalorder %s1232_s7, %s914_s3  ;;  %p919_p3 = scmp.lt.u32.totalorder %s1232_s7, %s1287_s2 }
 0x175   : > { %p920_p7 = scmp.lt.u32.totalorder %s918_s16, %s914_s3  ;;  %p922_p4 = scmp.lt.u32.totalorder %s914_s3, %s1232_s7 }
 0x176   : > { %p916_p1 = pnand %p915_p9, %p1108_p10 }
 0x177   : > { %p921_p13 = por %p920_p7, %p919_p3 }
 0x178   : > { %p917_p2 = pneg %p916_p1 }
 0x179   : > { %p923_p6 = por %p922_p4, %p921_p13 }
 0x17b   : > { %p924_p8 = pnand %p923_p6, %p917_p2 }
 0x17d   : > { %927 = shalt.err (!%p924_p8)
}
 0x17e   : > { %s995_s17 = smov 128   ;;  %s996_s19 = smov 8  }
 0x17f   : > { %768 = dma.vmem_to_hbm [thread:$0]  (%p1108_p10), %s1234_s4, 2048, %s1232_s7, %s496_s12, %s995_s17, %s995_s17, %s996_s19  }
 0x180 PF: > { %s525_s21 = sand.u32 1, %s966_s9   ;;  %p1305_p12 = scmp.ne.s32.totalorder %s1295_s20, 0 }
 0x181   : > { %p1306_p11 = scmp.ge.s32.totalorder %s986_s14, 2  ;;  %s526_s5 = scalar_lea.sflag [#allocation4], %s525_s21 }
 0x183   : > { %p779_p0 = pnand %p1306_p11, %p1305_p12 }
 0x185   : > { %961 = dma.done.wait (!%p779_p0), %s526_s5, 2048  }
 0x186   : > { %963 = vsyncadd (!%p779_p0), %s526_s5, 4294965248  ;;  %s19_s14 = sadd.s32 1, %s986_s14   ;;  %s1307_s9 = smov %s970_s10 }
 0x187   : > { %p16_p5 = scmp.ge.s32.totalorder %s19_s14, 4   ;;  %s1308_s10 = smov %s974_s11 }
 0x188   : > { %s1309_s11 = smov %s1117_s28  ;;  %s1310_s12 = smov %s982_s13 }
 0x189   : > { %s1311_s13 = smov %s1313_s25  ;;  %18 = sbr.rel (!%p16_p5) target bundleno = 7 (0x7), region = 82 }
 0x190   :  { %531 = vsyncpa [#allocation3], 1 }
 0x191   :  { %533 = vsyncpa [#allocation3 + $0x1], 1 }
 0x192   :  { %534 = vsyncpa [#allocation6], 1 }
 0x193   :  { %535 = vsyncpa [#allocation4], 1 }
 0x194   :  { %537 = vsyncpa [#allocation4 + $0x1], 1 }

</bundles_post_ra>
